<compile_context>
chip_gen: v6e
topology: v6e:2x2x1
jax: 0.10.0
libtpu: 0.0.40
codegen_flags: <defaults>
</compile_context>

<pallas_src>
import functools

import jax
import jax.numpy as jnp
from jax.experimental import pallas as pl
from jax.experimental.pallas import tpu as pltpu


_VMEM_LIMIT = 48 * 1024 * 1024  # <= v7x's 64 MiB physical VMEM, fine on v5e/v6e


def _pick_tm(m, target=512, min_steps=4):
    """Row-tile: multiple of 8, <= target, aiming for >= min_steps grid steps."""
    tm = min(target, -(-m // min_steps))
    return max(8, (tm // 8) * 8)


# ----------------------------------------------------------------------------
# Pallas kernels
# ----------------------------------------------------------------------------

def _conv1_fused_kernel(x_ref, s_ref, b_ref, wx_ref, *rest, n_prev):
    # Fused: relu(bn_i(x)) recompute + 1x1 conv over the (virtual) concat of
    # channel pieces, expressed as a K-split sum of dots.  Fused output ReLU.
    # x: [TM, C0], s/b: [1, C0], wx: [C0, Cb], y_k: [TM, Wk], wy_k: [Wk, Cb]
    y_refs = rest[:n_prev]
    wy_refs = rest[n_prev:2 * n_prev]
    o_ref = rest[2 * n_prev]
    xb = jnp.maximum(x_ref[...] * s_ref[...] + b_ref[...], 0.0)
    acc = jnp.dot(xb, wx_ref[...], preferred_element_type=jnp.float32)
    for k in range(n_prev):
        acc = acc + jnp.dot(y_refs[k][...], wy_refs[k][...],
                            preferred_element_type=jnp.float32)
    o_ref[...] = jnp.maximum(acc, 0.0)


def _conv3x3_stacked_kernel(xp_ref, w_ref, b_ref, o_ref, *, H, W):
    # In-kernel 3x3/stride-1 conv (no host im2col): nine shifted matmuls over a
    # 1-pixel-padded NHWC image, all BN-merged conv2 copies stacked along Cout.
    # xp: [1, H+2, W+2, Cb], w: [3, 3, Cb, Co], b: [1, Co], o: [1, H*W, Co]
    Cb = xp_ref.shape[-1]
    Co = o_ref.shape[-1]
    acc = jnp.zeros((H * W, Co), jnp.float32)
    for dy in range(3):
        for dx in range(3):
            patch = xp_ref[0, dy:dy + H, dx:dx + W, :].reshape(H * W, Cb)
            acc = acc + jnp.dot(patch, w_ref[dy, dx],
                                preferred_element_type=jnp.float32)
    o_ref[0] = jnp.maximum(acc + b_ref[...], 0.0)


def _transition_fused_kernel(x_ref, s_ref, b_ref, pmat_ref, *rest, n_prev):
    # Fused transition: relu(bn_L(x)) recompute, 2x2 avg-pool (commuted in front
    # of the linear 1x1 convs, expressed as a matmul with a constant pooling
    # matrix), stacked 1x1 convs over all merged copies (K-split over pieces),
    # bias + ReLU.  Processes 2 input rows -> 1 output row per grid step.
    # x: [1, 2, W, C0], s/b: [1, C0], pmat: [Wo, W], y_k: [1, 2, W, Wk],
    # wx: [C0, Tct], wy_k: [Wk, Tct], bias: [1, Tct], o: [1, 1, Wo, Tct]
    y_refs = rest[:n_prev]
    wx_ref = rest[n_prev]
    wy_refs = rest[n_prev + 1:2 * n_prev + 1]
    bias_ref = rest[2 * n_prev + 1]
    o_ref = rest[2 * n_prev + 2]

    pmat = pmat_ref[...]                                      # [Wo, W] (0.25 weights)

    xb = jnp.maximum(x_ref[0] * s_ref[0] + b_ref[0], 0.0)     # [2, W, C0]
    px = jnp.dot(pmat, xb[0] + xb[1], preferred_element_type=jnp.float32)
    acc = jnp.dot(px, wx_ref[...], preferred_element_type=jnp.float32)
    for k in range(n_prev):
        yk = y_refs[k][0]                                     # [2, W, Wk]
        pk = jnp.dot(pmat, yk[0] + yk[1], preferred_element_type=jnp.float32)
        acc = acc + jnp.dot(pk, wy_refs[k][...],
                            preferred_element_type=jnp.float32)
    o_ref[0, 0] = jnp.maximum(acc + bias_ref[...], 0.0)


# ----------------------------------------------------------------------------
# pallas_call wrappers
# ----------------------------------------------------------------------------

def conv1_fused(x2d, scale, bias, wx, ys, wys):
    # x2d: [M, C0] -> temp: [M, Cb]
    M, C0 = x2d.shape
    Cb = wx.shape[1]
    n_prev = len(ys)
    TM = _pick_tm(M)
    in_specs = [pl.BlockSpec((TM, C0), lambda m: (m, 0)),
                pl.BlockSpec((1, C0), lambda m: (0, 0)),
                pl.BlockSpec((1, C0), lambda m: (0, 0)),
                pl.BlockSpec((C0, Cb), lambda m: (0, 0))]
    for y in ys:
        in_specs.append(pl.BlockSpec((TM, y.shape[1]), lambda m: (m, 0)))
    for wy in wys:
        in_specs.append(pl.BlockSpec((wy.shape[0], Cb), lambda m: (0, 0)))
    return pl.pallas_call(
        functools.partial(_conv1_fused_kernel, n_prev=n_prev),
        out_shape=jax.ShapeDtypeStruct((M, Cb), jnp.float32),
        grid=(pl.cdiv(M, TM),),
        in_specs=in_specs,
        out_specs=pl.BlockSpec((TM, Cb), lambda m: (m, 0)),
        compiler_params=pltpu.CompilerParams(
            dimension_semantics=("parallel",), vmem_limit_bytes=_VMEM_LIMIT),
    )(x2d, scale, bias, wx, *ys, *wys)


def conv3x3_stacked(x_pad, w2, b2, H, W):
    # x_pad: [N, H+2, W+2, Cb] -> [N, H*W, Co]
    N = x_pad.shape[0]
    Cb = x_pad.shape[-1]
    Co = w2.shape[-1]
    return pl.pallas_call(
        functools.partial(_conv3x3_stacked_kernel, H=H, W=W),
        out_shape=jax.ShapeDtypeStruct((N, H * W, Co), jnp.float32),
        grid=(N,),
        in_specs=[pl.BlockSpec((1, H + 2, W + 2, Cb), lambda n: (n, 0, 0, 0)),
                  pl.BlockSpec((3, 3, Cb, Co), lambda n: (0, 0, 0, 0)),
                  pl.BlockSpec((1, Co), lambda n: (0, 0))],
        out_specs=pl.BlockSpec((1, H * W, Co), lambda n: (n, 0, 0)),
        compiler_params=pltpu.CompilerParams(
            dimension_semantics=("parallel",), vmem_limit_bytes=_VMEM_LIMIT),
    )(x_pad, w2, b2)


def transition_fused(x_nhwc, scale, bias, ys4, wx, wys, bias_all):
    # x: [N, H, W, C0], ys4[k]: [N, H, W, Wk] -> [N, Ho, Wo, Tct]
    N, H, W, C0 = x_nhwc.shape
    Ho, Wo = H // 2, W // 2
    Tct = wx.shape[1]
    n_prev = len(ys4)
    # Pooling matrix: out_row i averages input rows/cols 2i, 2i+1 with weight 0.25
    # (the two H rows are summed in-kernel before this matmul).
    pmat = jnp.kron(jnp.eye(Wo, dtype=jnp.float32),
                    jnp.array([[0.25, 0.25]], jnp.float32))    # [Wo, W]
    in_specs = [pl.BlockSpec((1, 2, W, C0), lambda n, h: (n, h, 0, 0)),
                pl.BlockSpec((1, C0), lambda n, h: (0, 0)),
                pl.BlockSpec((1, C0), lambda n, h: (0, 0)),
                pl.BlockSpec((Wo, W), lambda n, h: (0, 0))]
    for y in ys4:
        in_specs.append(pl.BlockSpec((1, 2, W, y.shape[-1]),
                                     lambda n, h: (n, h, 0, 0)))
    in_specs.append(pl.BlockSpec((C0, Tct), lambda n, h: (0, 0)))
    for wy in wys:
        in_specs.append(pl.BlockSpec((wy.shape[0], Tct), lambda n, h: (0, 0)))
    in_specs.append(pl.BlockSpec((1, Tct), lambda n, h: (0, 0)))
    return pl.pallas_call(
        functools.partial(_transition_fused_kernel, n_prev=n_prev),
        out_shape=jax.ShapeDtypeStruct((N, Ho, Wo, Tct), jnp.float32),
        grid=(N, Ho),
        in_specs=in_specs,
        out_specs=pl.BlockSpec((1, 1, Wo, Tct), lambda n, h: (n, h, 0, 0)),
        compiler_params=pltpu.CompilerParams(
            dimension_semantics=("parallel", "parallel"),
            vmem_limit_bytes=_VMEM_LIMIT),
    )(x_nhwc, scale, bias, pmat, *ys4, wx, *wys, bias_all)


# ----------------------------------------------------------------------------
# Parameter construction (mirrors CanonizedDenseBlock.__init__ BN-merging)
# ----------------------------------------------------------------------------

def make_bn(key, n):
    k1, k2, k3, k4 = jax.random.split(key, 4)
    return {
        'running_mean': 0.1 * jax.random.normal(k1, (n,), jnp.float32),
        'running_var': jax.random.uniform(k2, (n,), jnp.float32, 0.5, 1.5),
        'weight': 1.0 + 0.1 * jax.random.normal(k3, (n,), jnp.float32),
        'bias': 0.1 * jax.random.normal(k4, (n,), jnp.float32),
        'eps': 1e-5,
    }


def slice_bn(bn, start, end):
    assert end > start
    return {k: (v if k == 'eps' else v[start:end]) for k, v in bn.items()}


def bn_affine(bn):
    scale = bn['weight'] / jnp.sqrt(bn['running_var'] + bn['eps'])
    bias = bn['bias'] - bn['running_mean'] * scale
    return scale, bias


def merge_conv_bn(weight, bias, bn):
    # Mirrors CanonizedDenseBlock.merge (regular conv, not transpose).
    scale = bn['weight'] / jnp.sqrt(bn['running_var'] + bn['eps'])
    if bias is None:
        bias = jnp.zeros((weight.shape[0],), weight.dtype)
    idx = (slice(None),) + (None,) * (weight.ndim - 1)
    new_w = weight * scale[idx]
    new_b = (bias - bn['running_mean']) * scale + bn['bias']
    return new_w, new_b


def build_canonized(key, num_layers1, num_layers2, C0, growth, bottleneck, trans_out):
    keys = list(jax.random.split(key, 4 * num_layers1 + num_layers2 + 8))
    kit = iter(keys)

    block1 = []
    for i in range(num_layers1):
        cin = C0 + i * growth
        block1.append({
            'norm1': make_bn(next(kit), cin),
            'conv1_w': 0.1 * jax.random.normal(next(kit), (bottleneck, cin, 1, 1), jnp.float32),
            'conv2_w': 0.1 * jax.random.normal(next(kit), (growth, bottleneck, 3, 3), jnp.float32),
        })
    trans_norm = make_bn(next(kit), C0 + num_layers1 * growth)
    trans_conv_w = 0.1 * jax.random.normal(
        next(kit), (trans_out, C0 + num_layers1 * growth, 1, 1), jnp.float32)
    block2_norms = [make_bn(next(kit), trans_out + i * growth) for i in range(num_layers2)]
    trans2_norm = make_bn(next(kit), trans_out)

    # initial BNs: [0:C0] slice of each denselayer's norm1, plus transition norm.
    initial_bns = [slice_bn(block1[i]['norm1'], 0, C0) for i in range(num_layers1)]
    initial_bns.append(slice_bn(trans_norm, 0, C0))

    # Untangled layers: one conv1 + (num_layers1 - i) BN-merged copies of conv2.
    layers = []
    slice_init = C0
    for i in range(num_layers1):
        l = {'conv1_w': block1[i]['conv1_w'][:, :, 0, 0], 'conv2': []}
        for j in range(i + 1, num_layers1 + 1):
            norm = block1[j]['norm1'] if j < num_layers1 else trans_norm
            bn_params = slice_bn(norm, slice_init, slice_init + growth)
            l['conv2'].append(merge_conv_bn(block1[i]['conv2_w'], None, bn_params))
        slice_init += growth
        layers.append(l)

    # Untangled transition: num_layers2 + 1 BN-merged copies of the 1x1 transition conv.
    w2d = trans_conv_w[:, :, 0, 0]
    transition = []
    for i in range(num_layers2):
        transition.append(merge_conv_bn(w2d, None, slice_bn(block2_norms[i], 0, trans_out)))
    transition.append(merge_conv_bn(w2d, None, slice_bn(trans2_norm, 0, trans_out)))

    return initial_bns, layers, transition


def pack_params(initial_bns, layers, transition, C0, growth):
    """One-time weight packing: transposes, Cout stacking, K-split zero-padding."""
    L = len(layers)
    packed = {'C0': C0, 'g': growth, 'L': L, 'bn_scale': [], 'bn_bias': [],
              'layers': []}
    for bn in initial_bns:
        s, b = bn_affine(bn)
        packed['bn_scale'].append(s.reshape(1, -1))
        packed['bn_bias'].append(b.reshape(1, -1))

    for i, l in enumerate(layers):
        w1t = jnp.transpose(l['conv1_w'])                        # [Cin_i, Cb]
        cb = w1t.shape[1]
        entry = {'wx': w1t[:C0], 'wy': []}
        for k in range(i):
            wk_cols = (L - k) * growth                           # width of y_k slab
            seg = w1t[C0 + k * growth:C0 + (k + 1) * growth]     # [g, Cb]
            wy = jnp.zeros((wk_cols, cb), jnp.float32)
            wy = wy.at[(i - k - 1) * growth:(i - k) * growth].set(seg)
            entry['wy'].append(wy)
        # All conv2 copies of this layer stacked along Cout, as [3, 3, Cb, Co].
        entry['w2'] = jnp.concatenate(
            [jnp.transpose(w, (2, 3, 1, 0)) for (w, _) in l['conv2']], axis=-1)
        entry['b2'] = jnp.concatenate([b for (_, b) in l['conv2']]).reshape(1, -1)
        packed['layers'].append(entry)

    # Transition: all copies stacked along Cout, K split over channel pieces.
    w_allT = jnp.concatenate([jnp.transpose(w) for (w, _) in transition], axis=1)
    b_all = jnp.concatenate([b for (_, b) in transition]).reshape(1, -1)
    tct = w_allT.shape[1]
    tr = {'wx': w_allT[:C0], 'wy': [], 'bias': b_all,
          'ct': transition[0][0].shape[0], 'T': len(transition)}
    for k in range(L):
        wk_cols = (L - k) * growth
        seg = w_allT[C0 + k * growth:C0 + (k + 1) * growth]
        wy = jnp.zeros((wk_cols, tct), jnp.float32)
        wy = wy.at[(L - k - 1) * growth:(L - k) * growth].set(seg)
        tr['wy'].append(wy)
    packed['transition'] = tr
    return packed


# ----------------------------------------------------------------------------
# Forward (Pallas) + pure-JAX reference
# ----------------------------------------------------------------------------

def canonized_forward(x_nchw, packed):
    x = jnp.transpose(x_nchw, (0, 2, 3, 1)).astype(jnp.float32)   # NCHW -> NHWC
    N, H, W, C0 = x.shape
    M = N * H * W
    L, g = packed['L'], packed['g']
    x2d = x.reshape(M, C0)

    ys2d, ys4d = [], []   # per-layer stacked conv2 output slabs (flat / NHWC views)
    for i in range(L):
        entry = packed['layers'][i]
        # conv1 fused with BN+ReLU recompute of x and K-split dots over pieces.
        temp = conv1_fused(x2d, packed['bn_scale'][i], packed['bn_bias'][i],
                           entry['wx'], ys2d[:i], entry['wy'])     # [M, Cb]
        cb = entry['wx'].shape[1]
        # 1-pixel halo pad for the 3x3 conv (layout glue only; no 9x im2col).
        temp_pad = jnp.pad(temp.reshape(N, H, W, cb),
                           ((0, 0), (1, 1), (1, 1), (0, 0)))
        y = conv3x3_stacked(temp_pad, entry['w2'], entry['b2'], H, W)  # [N, H*W, Co]
        co = entry['w2'].shape[-1]
        ys2d.append(y.reshape(M, co))
        ys4d.append(y.reshape(N, H, W, co))

    tr = packed['transition']
    pooled = transition_fused(x, packed['bn_scale'][L], packed['bn_bias'][L],
                              ys4d, tr['wx'], tr['wy'], tr['bias'])  # [N,Ho,Wo,T*ct]
    ct, T = tr['ct'], tr['T']
    return [jnp.transpose(pooled[..., t * ct:(t + 1) * ct], (0, 3, 1, 2))
            for t in range(T)]


def reference_forward(x_nchw, initial_bns, layers, transition):
    x = jnp.transpose(x_nchw, (0, 2, 3, 1)).astype(jnp.float32)
    xs = []
    for bn in initial_bns:
        scale, bias = bn_affine(bn)
        xs.append(jnp.maximum(x * scale + bias, 0.0))
    for i, l in enumerate(layers):
        temp = jnp.maximum(jnp.einsum('nhwc,oc->nhwo', xs[i], l['conv1_w']), 0.0)
        for j, (w, b) in enumerate(l['conv2']):
            w_hwio = jnp.transpose(w, (2, 3, 1, 0))
            t2 = jax.lax.conv_general_dilated(
                temp, w_hwio, (1, 1), 'SAME',
                dimension_numbers=('NHWC', 'HWIO', 'NHWC')) + b
            t2 = jnp.maximum(t2, 0.0)
            xs[i + j + 1] = jnp.concatenate([xs[i + j + 1], t2], axis=-1)
    outs = []
    N, H, W, _ = xs[-1].shape
    for (w, b) in transition:
        t = jnp.einsum('nhwc,oc->nhwo', xs[-1], w) + b
        Co = w.shape[0]
        t = t.reshape(N, H // 2, 2, W // 2, 2, Co).mean(axis=(2, 4))
        outs.append(jnp.transpose(jnp.maximum(t, 0.0), (0, 3, 1, 2)))
    return outs


# ----------------------------------------------------------------------------
# Main
# ----------------------------------------------------------------------------

if __name__ == "__main__":
    # Small synthetic DenseNet block configuration (initial=True, with transition).
    N, C0, H, W = 2, 8, 16, 16
    num_layers1 = 2     # len(block1)
    num_layers2 = 2     # len(block2)
    growth = 4          # conv2 out_channels (growth rate)
    bottleneck = 8      # conv1 out_channels (bn_size * growth)
    trans_out = 8       # transition1.conv out_channels

    key = jax.random.PRNGKey(0)
    kx, kp = jax.random.split(key)
    x = jax.random.normal(kx, (N, C0, H, W), jnp.float32)  # PyTorch-style NCHW input

    initial_bns, layers, transition = build_canonized(
        kp, num_layers1, num_layers2, C0, growth, bottleneck, trans_out)
    packed = pack_params(initial_bns, layers, transition, C0, growth)

    outs = canonized_forward(x, packed)
    outs = [jax.block_until_ready(o) for o in outs]

    # Correctness check against a pure-JAX reference.
    refs = reference_forward(x, initial_bns, layers, transition)
    for o, r in zip(outs, refs):
        assert o.shape == r.shape == (N, trans_out, H // 2, W // 2)
        err = float(jnp.max(jnp.abs(o - r)))
        assert err < 1e-3, f"mismatch vs reference: {err}"

    print("KERNEL_OK")
</pallas_src>

<mosaic_0001>
module attributes {stable_mosaic.version = 11 : i64} {
  func.func @_conv1_fused_kernel(%arg0: i32, %arg1: memref<128x8xf32, #tpu.memory_space<vmem>>, %arg2: memref<1x8xf32, #tpu.memory_space<vmem>>, %arg3: memref<1x8xf32, #tpu.memory_space<vmem>>, %arg4: memref<8x8xf32, #tpu.memory_space<vmem>>, %arg5: memref<128x8xf32, #tpu.memory_space<vmem>>) attributes {dimension_semantics = [#tpu.dimension_semantics<parallel>], iteration_bounds = array<i64: 4>, scalar_prefetch = 0 : i64, scratch_operands = 0 : i64, tpu.core_type = #tpu.core_type<tc>, window_params = [{transform_indices = @transform_0, window_bounds = array<i64: 128, 8>}, {pipeline_mode = #tpu.pipeline_mode<synchronous>, transform_indices = @transform_1, window_bounds = array<i64: 1, 8>}, {pipeline_mode = #tpu.pipeline_mode<synchronous>, transform_indices = @transform_2, window_bounds = array<i64: 1, 8>}, {pipeline_mode = #tpu.pipeline_mode<synchronous>, transform_indices = @transform_3, window_bounds = array<i64: 8, 8>}, {transform_indices = @transform_4, window_bounds = array<i64: 128, 8>}]} {
    %c0 = arith.constant 0 : index
    %c0_0 = arith.constant 0 : index
    %0 = vector.load %arg1[%c0, %c0_0] : memref<128x8xf32, #tpu.memory_space<vmem>>, vector<128x8xf32>
    %c0_1 = arith.constant 0 : index
    %c0_2 = arith.constant 0 : index
    %1 = vector.load %arg2[%c0_1, %c0_2] : memref<1x8xf32, #tpu.memory_space<vmem>>, vector<1x8xf32>
    %2 = vector.broadcast %1 : vector<1x8xf32> to vector<128x8xf32>
    %3 = arith.mulf %0, %2 : vector<128x8xf32>
    %c0_3 = arith.constant 0 : index
    %c0_4 = arith.constant 0 : index
    %4 = vector.load %arg3[%c0_3, %c0_4] : memref<1x8xf32, #tpu.memory_space<vmem>>, vector<1x8xf32>
    %5 = vector.broadcast %4 : vector<1x8xf32> to vector<128x8xf32>
    %6 = arith.addf %3, %5 : vector<128x8xf32>
    %cst = arith.constant 0.000000e+00 : f32
    %7 = vector.broadcast %cst : f32 to vector<128x8xf32>
    %8 = arith.maximumf %6, %7 : vector<128x8xf32>
    %c0_5 = arith.constant 0 : index
    %c0_6 = arith.constant 0 : index
    %9 = vector.load %arg4[%c0_5, %c0_6] : memref<8x8xf32, #tpu.memory_space<vmem>>, vector<8x8xf32>
    %cst_7 = arith.constant dense<0.000000e+00> : vector<128x8xf32>
    %10 = tpu.matmul %8, %9, %cst_7 {dimension_numbers = #tpu.dot_dimension_numbers<[1], [0], [0], [1], [0, 0, 1, 1], [], []>} : vector<128x8xf32>, vector<8x8xf32>, vector<128x8xf32> -> vector<128x8xf32>
    %cst_8 = arith.constant 0.000000e+00 : f32
    %11 = vector.broadcast %cst_8 : f32 to vector<128x8xf32>
    %12 = arith.maximumf %10, %11 : vector<128x8xf32>
    %c0_9 = arith.constant 0 : index
    %c0_10 = arith.constant 0 : index
    %13 = vector.load %arg5[%c0_9, %c0_10] : memref<128x8xf32, #tpu.memory_space<vmem>>, vector<128x8xf32>
    tpu.vector_store %arg5[%c0_9, %c0_10], %12 {strides = array<i32>} : memref<128x8xf32, #tpu.memory_space<vmem>>, vector<128x8xf32>,
    return
  }
  func.func @transform_0(%arg0: i32) -> (i32, i32) {
    %c0_i32 = arith.constant 0 : i32
    %c0_i32_0 = arith.constant 0 : i32
    return %arg0, %c0_i32 : i32, i32
  }
  func.func @transform_1(%arg0: i32) -> (i32, i32) {
    %c0_i32 = arith.constant 0 : i32
    %c0_i32_0 = arith.constant 0 : i32
    %c0_i32_1 = arith.constant 0 : i32
    return %c0_i32, %c0_i32_0 : i32, i32
  }
  func.func @transform_2(%arg0: i32) -> (i32, i32) {
    %c0_i32 = arith.constant 0 : i32
    %c0_i32_0 = arith.constant 0 : i32
    %c0_i32_1 = arith.constant 0 : i32
    return %c0_i32, %c0_i32_0 : i32, i32
  }
  func.func @transform_3(%arg0: i32) -> (i32, i32) {
    %c0_i32 = arith.constant 0 : i32
    %c0_i32_0 = arith.constant 0 : i32
    %c0_i32_1 = arith.constant 0 : i32
    return %c0_i32, %c0_i32_0 : i32, i32
  }
  func.func @transform_4(%arg0: i32) -> (i32, i32) {
    %c0_i32 = arith.constant 0 : i32
    %c0_i32_0 = arith.constant 0 : i32
    return %arg0, %c0_i32 : i32, i32
  }
}

</mosaic_0001>

<bundles_post_ra>
// kernel: tpu_custom_call.1
= control target key start
LH: loop header
LB: loop body
LE: loop exit
PB: predicated region body
PF: predicated region fallthrough
CT: control target
= control target key end

     0   :  { %s677_s15 = smov 0   ;;  %s814_s0 = inlined_call_operand.vmem [shape: f32[512,8], index: 0, kind: input, shape index: {}]   ;;  %s815_s1 = inlined_call_operand.vmem [shape: f32[1,8], index: 1, kind: input, shape index: {}]   ;;  %s816_s2 = inlined_call_operand.vmem [shape: f32[1,8], index: 2, kind: input, shape index: {}]   ;;  %s817_s3 = inlined_call_operand.vmem [shape: f32[8,8], index: 3, kind: input, shape index: {}]   ;;  %s818_s4 = inlined_call_operand.vmem [shape: f32[512,8], index: 4, kind: output, shape index: {}]  }
   0x1 LB: > { %s562_s16 = sadd.s32 4294967295, %s650_s15   ;;  %p566_p0 = scmp.ge.s32.totalorder %s650_s15, 1  ;;  %s650_s15 = sphi %s677_s15, %s14_s15  }
   0x2   : > { %p163_p1 = scmp.lt.s32.totalorder %s650_s15, 5 }
   0x4   : > { %p164_p2 = pnand %p566_p0, %p163_p1 }
   0x5   : > { %s567_s19 = sshll.u32 (!%p164_p2), %s562_s16, 4 }
   0x6   : > { %167 = sbr.rel (%p164_p2) target bundleno = 233 (0xe9), region = 36  ;;  %p190_p3 = scmp.lt.s32.totalorder (!%p164_p2), %s567_s19, 63 }
   0xb   : > { %v279_v0 = vld [vmem:[%s817_s3] sm:$0xff]  ;;  %s820_s19 = smov (!%p190_p3, %s567_s19), 63  ;;  %vm280_vm0 = vcmask 64512  }
   0xc   : > { %608 = vmatprep.subr.mxu0 %v279_v0  ;;  %634 = vmatprep.subr.mxu1 %v279_v0  ;;  %s568_s20 = sshll.u32 %s820_s19, 3  ;;  %v694_v1 = vld [vmem:[%s815_s1] ss:$0 sm:$0xff] }
   0xd   : > { %609 = vmatpush3.msra.mxu0 %v279_v0  ;;  %635 = vmatpush3.msra.mxu1 %v279_v0  ;;  %s701_s25 = scalar_lea.vmem %s814_s0, %s568_s20  ;;  %v706_v2 = vld [vmem:[%s816_s2] ss:$0 sm:$0xff]  ;;  %s777_s30 = scalar_lea.vmem %s818_s4, %s568_s20 }
   0xe   : > { %v201_v3 = vld [vmem:[%s701_s25] sm:$0xff]  ;;  %v202_v5 = vld [vmem:[%s701_s25 + $0x8] sm:$0xff]  ;;  %v203_v10 = vld [vmem:[%s701_s25 + $0x10] sm:$0xff] }
   0xf   : > { %v209_v4 = vld [vmem:[%s701_s25 + $0x40] sm:$0xff]  ;;  %v224_v6 = vmul.f32 %v694_v1, %v201_v3  ;;  %v225_v8 = vmul.f32 %v694_v1, %v202_v5  ;;  %v210_v9 = vld [vmem:[%s701_s25 + $0x48] sm:$0xff]  ;;  %v211_v11 = vld [vmem:[%s701_s25 + $0x50] sm:$0xff]  ;;  %v226_v13 = vmul.f32 %v694_v1, %v203_v10 }
  0x10   : > { %v232_v7 = vmul.f32 %v694_v1, %v209_v4  ;;  %v233_v12 = vmul.f32 %v694_v1, %v210_v9  ;;  %v234_v14 = vmul.f32 %v694_v1, %v211_v11  ;;  %v204_v15 = vld [vmem:[%s701_s25 + $0x18] sm:$0xff]  ;;  %v205_v25 = vld [vmem:[%s701_s25 + $0x20] sm:$0xff]  ;;  %v206_v27 = vld [vmem:[%s701_s25 + $0x28] sm:$0xff] }
  0x11   : > { %v212_v16 = vld [vmem:[%s701_s25 + $0x58] sm:$0xff]  ;;  %v247_v17 = vadd.f32 %v706_v2, %v224_v6  ;;  %v248_v19 = vadd.f32 %v706_v2, %v225_v8  ;;  %v227_v20 = vmul.f32 %v694_v1, %v204_v15  ;;  %v249_v22 = vadd.f32 %v706_v2, %v226_v13  ;;  %v213_v26 = vld [vmem:[%s701_s25 + $0x60] sm:$0xff]  ;;  %v214_v32 = vld [vmem:[%s701_s25 + $0x68] sm:$0xff] }
  0x12   : > { %v255_v18 = vadd.f32 %v706_v2, %v232_v7  ;;  %v256_v21 = vadd.f32 %v706_v2, %v233_v12  ;;  %v257_v23 = vadd.f32 %v706_v2, %v234_v14  ;;  %v235_v24 = vmul.f32 %v694_v1, %v212_v16  ;;  %v207_v33 = vld [vmem:[%s701_s25 + $0x30] sm:$0xff]  ;;  %v208_v43 = vld [vmem:[%s701_s25 + $0x38] sm:$0xff] }
  0x13   : > { %v263_v28 = vmax.f32 %v247_v17, 0.0  ;;  %v264_v30 = vmax.f32 %v248_v19, 0.0  ;;  %v250_v31 = vadd.f32 %v706_v2, %v227_v20  ;;  %v215_v34 = vld [vmem:[%s701_s25 + $0x70] sm:$0xff]  ;;  %v265_v36 = vmax.f32 %v249_v22, 0.0  ;;  %v216_v48 = vld [vmem:[%s701_s25 + $0x78] sm:$0xff] }
  0x14   : > { %v271_v29 = vmax.f32 %v255_v18, 0.0  ;;  %v272_v35 = vmax.f32 %v256_v21, 0.0  ;;  %v273_v37 = vmax.f32 %v257_v23, 0.0  ;;  %v258_v38 = vadd.f32 %v706_v2, %v235_v24 }
  0x15   : > { %610 = vmatprep.mubr.msk.f32.mxu0 %vm280_vm0, %v263_v28  ;;  %v266_v39 = vmax.f32 %v250_v31, 0.0  ;;  %v228_v40 = vmul.f32 %v694_v1, %v205_v25  ;;  %v236_v41 = vmul.f32 %v694_v1, %v213_v26  ;;  %v229_v42 = vmul.f32 %v694_v1, %v206_v27 }
  0x16   : > { %622 = vmatprep.mubr.msk.f32.mxu1 %vm280_vm0, %v271_v29  ;;  %611 = vmatmul.mubr.msk.f32.vlgmr.msra.gmra.mxu0 %vm280_vm0, %v264_v30  ;;  %v274_v44 = vmax.f32 %v258_v38, 0.0  ;;  %v237_v45 = vmul.f32 %v694_v1, %v214_v32  ;;  %v230_v46 = vmul.f32 %v694_v1, %v207_v33  ;;  %v238_v47 = vmul.f32 %v694_v1, %v215_v34 }
  0x17   : > { %623 = vmatmul.mubr.msk.f32.vlgmr.msra.gmra.mxu1 %vm280_vm0, %v272_v35  ;;  %613 = vmatprep.mubr.msk.f32.mxu0 %vm280_vm0, %v265_v36  ;;  %v251_v49 = vadd.f32 %v706_v2, %v228_v40  ;;  %v259_v50 = vadd.f32 %v706_v2, %v236_v41  ;;  %v252_v51 = vadd.f32 %v706_v2, %v229_v42 }
  0x18   : > { %625 = vmatprep.mubr.msk.f32.mxu1 %vm280_vm0, %v273_v37  ;;  %v260_v52 = vadd.f32 %v706_v2, %v237_v45  ;;  %v253_v53 = vadd.f32 %v706_v2, %v230_v46  ;;  %v261_v54 = vadd.f32 %v706_v2, %v238_v47  ;;  %v231_v55 = vmul.f32 %v694_v1, %v208_v43 }
  0x19   : > { %v267_v56 = vmax.f32 %v251_v49, 0.0  ;;  %v275_v57 = vmax.f32 %v259_v50, 0.0  ;;  %v239_v58 = vmul.f32 %v694_v1, %v216_v48  ;;  %v268_v59 = vmax.f32 %v252_v51, 0.0 }
  0x1a   : > { %614 = vmatmul.mubr.msk.f32.gmra.mxu0 %vm280_vm0, %v266_v39  ;;  %v276_v60 = vmax.f32 %v260_v52, 0.0  ;;  %v254_v61 = vadd.f32 %v706_v2, %v231_v55  ;;  %v269_v62 = vmax.f32 %v253_v53, 0.0  ;;  %v277_v63 = vmax.f32 %v261_v54, 0.0 }
  0x1b   : > { %626 = vmatmul.mubr.msk.f32.gmra.mxu1 %vm280_vm0, %v274_v44  ;;  %616 = vmatprep.mubr.msk.f32.mxu0 %vm280_vm0, %v267_v56  ;;  %v262_v0 = vadd.f32 %v706_v2, %v239_v58 }
  0x1c   : > { %628 = vmatprep.mubr.msk.f32.mxu1 %vm280_vm0, %v275_v57  ;;  %v270_v1 = vmax.f32 %v254_v61, 0.0 }
  0x1d   : > { %v278_v3 = vmax.f32 %v262_v0, 0.0 }
  0x1e   : > { %617 = vmatmul.mubr.msk.f32.gmra.mxu0 %vm280_vm0, %v268_v59 }
  0x1f   : > { %629 = vmatmul.mubr.msk.f32.gmra.mxu1 %vm280_vm0, %v276_v60  ;;  %619 = vmatprep.mubr.msk.f32.mxu0 %vm280_vm0, %v269_v62 }
  0x20   : > { %631 = vmatprep.mubr.msk.f32.mxu1 %vm280_vm0, %v277_v63 }
  0x22   : > { %620 = vmatmul.mubr.msk.f32.gmra.mxu0 %vm280_vm0, %v270_v1 }
  0x23   : > { %632 = vmatmul.mubr.msk.f32.gmra.mxu1 %vm280_vm0, %v278_v3 }
  0xd6   : > { %v612_v2 = vpop.f32.mrf.mxu0 }
  0xd7   : > { %v624_v4 = vpop.f32.mrf.mxu1  ;;  %v475_v5 = vmax.f32 %v612_v2, 0.0 }
  0xd8   : > { %v483_v6 = vmax.f32 %v624_v4, 0.0  ;;  %v395_v7 = vpop.f32.mrf.mxu0 }
  0xd9   : > { %v435_v8 = vpop.f32.mrf.mxu1  ;;  %491 = vst.msk [vmem:[%s777_s30 + $0x8] sm:$0xff] %vm280_vm0, %v475_v5  ;;  %v474_v9 = vmax.f32 %v395_v7, 0.0 }
  0xda   : > { %499 = vst.msk [vmem:[%s777_s30 + $0x48] sm:$0xff] %vm280_vm0, %v483_v6  ;;  %v482_v10 = vmax.f32 %v435_v8, 0.0  ;;  %v615_v11 = vpop.f32.mrf.mxu0 }
  0xdb   : > { %v627_v12 = vpop.f32.mrf.mxu1  ;;  %490 = vst.msk [vmem:[%s777_s30] sm:$0xff] %vm280_vm0, %v474_v9  ;;  %v477_v13 = vmax.f32 %v615_v11, 0.0 }
  0xdc   : > { %498 = vst.msk [vmem:[%s777_s30 + $0x40] sm:$0xff] %vm280_vm0, %v482_v10  ;;  %v485_v14 = vmax.f32 %v627_v12, 0.0  ;;  %v405_v15 = vpop.f32.mrf.mxu0 }
  0xdd   : > { %v445_v16 = vpop.f32.mrf.mxu1  ;;  %493 = vst.msk [vmem:[%s777_s30 + $0x18] sm:$0xff] %vm280_vm0, %v477_v13  ;;  %v476_v17 = vmax.f32 %v405_v15, 0.0 }
  0xde   : > { %501 = vst.msk [vmem:[%s777_s30 + $0x58] sm:$0xff] %vm280_vm0, %v485_v14  ;;  %v484_v18 = vmax.f32 %v445_v16, 0.0  ;;  %v618_v19 = vpop.f32.mrf.mxu0 }
  0xdf   : > { %v630_v20 = vpop.f32.mrf.mxu1  ;;  %492 = vst.msk [vmem:[%s777_s30 + $0x10] sm:$0xff] %vm280_vm0, %v476_v17  ;;  %v479_v21 = vmax.f32 %v618_v19, 0.0 }
  0xe0   : > { %500 = vst.msk [vmem:[%s777_s30 + $0x50] sm:$0xff] %vm280_vm0, %v484_v18  ;;  %v487_v22 = vmax.f32 %v630_v20, 0.0  ;;  %v415_v23 = vpop.f32.mrf.mxu0 }
  0xe1   : > { %v455_v24 = vpop.f32.mrf.mxu1  ;;  %495 = vst.msk [vmem:[%s777_s30 + $0x28] sm:$0xff] %vm280_vm0, %v479_v21  ;;  %v478_v25 = vmax.f32 %v415_v23, 0.0 }
  0xe2   : > { %503 = vst.msk [vmem:[%s777_s30 + $0x68] sm:$0xff] %vm280_vm0, %v487_v22  ;;  %v486_v26 = vmax.f32 %v455_v24, 0.0  ;;  %v621_v27 = vpop.f32.mrf.mxu0 }
  0xe3   : > { %v633_v28 = vpop.f32.mrf.mxu1  ;;  %494 = vst.msk [vmem:[%s777_s30 + $0x20] sm:$0xff] %vm280_vm0, %v478_v25  ;;  %v481_v29 = vmax.f32 %v621_v27, 0.0 }
  0xe4   : > { %502 = vst.msk [vmem:[%s777_s30 + $0x60] sm:$0xff] %vm280_vm0, %v486_v26  ;;  %v489_v30 = vmax.f32 %v633_v28, 0.0  ;;  %v425_v31 = vpop.f32.mrf.mxu0 }
  0xe5   : > { %v465_v32 = vpop.f32.mrf.mxu1  ;;  %497 = vst.msk [vmem:[%s777_s30 + $0x38] sm:$0xff] %vm280_vm0, %v481_v29  ;;  %v480_v33 = vmax.f32 %v425_v31, 0.0 }
  0xe6   : > { %505 = vst.msk [vmem:[%s777_s30 + $0x78] sm:$0xff] %vm280_vm0, %v489_v30  ;;  %v488_v34 = vmax.f32 %v465_v32, 0.0 }
  0xe7   : > { %496 = vst.msk [vmem:[%s777_s30 + $0x30] sm:$0xff] %vm280_vm0, %v480_v33 }
  0xe8   : > { %504 = vst.msk [vmem:[%s777_s30 + $0x70] sm:$0xff] %vm280_vm0, %v488_v34 }
  0xe9 PF: > { %s14_s15 = sadd.s32 1, %s650_s15  }
  0xea   : > { %p11_p4 = scmp.ge.s32.totalorder %s14_s15, 6  }
  0xec   :  { %13 = sbr.rel (!%p11_p4) target bundleno = 1 (0x1), region = 66 }

</bundles_post_ra>
